<compile_context>
chip_gen: v6e
topology: v6e:2x2x1
jax: 0.10.0
libtpu: 0.0.40
codegen_flags: <defaults>
</compile_context>

<pallas_src>
import jax
import jax.numpy as jnp
from jax.experimental import pallas as pl
from jax.experimental.pallas import tpu as pltpu


_LANE = 128
_MAX_TILE_COLS = 2048            # lane-dense col tile (multiple of 128)
_BLOCK_BYTES = 4 * 1024 * 1024   # per-block cap; double-buffered in+out ~16 MiB
_SMALL_ELEMS = 8192              # below this, fused XLA beats kernel launch cost


def _round_up(n, m):
    return ((n + m - 1) // m) * m


# ---------------------------------------------------------------------------
# Kernel
# ---------------------------------------------------------------------------
def _affine_kernel(params_ref, x_ref, o_ref):
    # params_ref: SMEM f32[2] = [theta_1, theta_0]  (scalar prefetch).
    t1 = params_ref[0]
    t0 = params_ref[1]
    # Upcast in-vreg (v5e VPU has no bf16 math); pure VPU FMA over the tile.
    x = x_ref[...].astype(jnp.float32)
    o_ref[...] = (x * t1 + t0).astype(o_ref.dtype)


# ---------------------------------------------------------------------------
# Wrapper
# ---------------------------------------------------------------------------
def model_number_questions(x, theta_0, theta_1):
    """y = theta_1 * x + theta_0 (elementwise, scalar parameters)."""
    x = jnp.asarray(x)

    # Match torch promotion with f32 parameters: floats stay float (>= f32),
    # integer inputs promote to f32.
    if jnp.issubdtype(x.dtype, jnp.floating):
        out_dtype = jnp.promote_types(x.dtype, jnp.float32)
    else:
        out_dtype = jnp.float32

    t1 = jnp.asarray(theta_1, jnp.float32).reshape(())
    t0 = jnp.asarray(theta_0, jnp.float32).reshape(())

    n = int(x.size)
    orig_shape = x.shape

    # ---- Fast path: tiny or lane-unfriendly inputs -> fused XLA elementwise.
    lane_ok = n > 0 and (
        n % _LANE == 0 or (x.ndim >= 1 and orig_shape[-1] % _LANE == 0)
    )
    if n < _SMALL_ELEMS or not lane_ok:
        return (t1 * x + t0).astype(out_dtype)

    # ---- Kernel path: free metadata reshape to a lane-dense (rows, width) view.
    if x.ndim >= 1 and orig_shape[-1] % _LANE == 0:
        width = orig_shape[-1]
    else:
        width = _LANE
        for w in (2048, 1024, 512, 256):
            if n % w == 0:
                width = w
                break
    rows = n // width
    xv = x.reshape(rows, width)        # contiguous row-major -> no HBM pass

    in_b = xv.dtype.itemsize
    out_b = jnp.dtype(out_dtype).itemsize
    eb = max(in_b, out_b)

    tile_cols = width if width <= _MAX_TILE_COLS else _MAX_TILE_COLS
    grid_cols = pl.cdiv(width, tile_cols)

    cap = max(8, (_BLOCK_BYTES // (tile_cols * eb)) // 8 * 8)
    if rows <= cap:
        tile_rows = rows               # single row block (== full dim, always legal)
        grid_rows = 1
    else:
        tile_rows = cap
        grid_rows = pl.cdiv(rows, tile_rows)
        if grid_rows % 2 == 1:         # v7x: balance the 2 TensorCores
            tile_rows = max(8, _round_up(pl.cdiv(rows, grid_rows + 1), 8))
            grid_rows = pl.cdiv(rows, tile_rows)
    if grid_rows * grid_cols == 1 and rows >= 16:
        # Guarantee >= 2 parallel steps so v7x can use both TensorCores.
        tile_rows = _round_up(pl.cdiv(rows, 2), 8)
        grid_rows = pl.cdiv(rows, tile_rows)

    params = jnp.stack([t1, t0])       # f32[2] = [theta_1, theta_0]

    out = pl.pallas_call(
        _affine_kernel,
        out_shape=jax.ShapeDtypeStruct((rows, width), out_dtype),
        grid_spec=pltpu.PrefetchScalarGridSpec(
            num_scalar_prefetch=1,
            grid=(grid_rows, grid_cols),
            in_specs=[
                pl.BlockSpec((tile_rows, tile_cols), lambda i, j, p: (i, j)),
            ],
            out_specs=pl.BlockSpec((tile_rows, tile_cols), lambda i, j, p: (i, j)),
        ),
        compiler_params=pltpu.CompilerParams(
            dimension_semantics=("parallel", "parallel"),
            vmem_limit_bytes=32 * 1024 * 1024,
        ),
    )(params, xv)

    return out.reshape(orig_shape)     # free reshape back


# ---------------------------------------------------------------------------
# Demo / correctness check
# ---------------------------------------------------------------------------
if __name__ == "__main__":
    # Parameter init matching the module's __init__: theta_0=[1], theta_1=[2].
    theta_0 = 1.0
    theta_1 = 2.0

    key = jax.random.PRNGKey(0)
    k1, k2, k3, k4, k5 = jax.random.split(key, 5)

    # Main case: large enough to take the Pallas path (128 x 256 f32, grid=2).
    x = jax.random.uniform(k1, (128, 256), dtype=jnp.float32,
                           minval=0.0, maxval=10.0)
    y = jax.block_until_ready(model_number_questions(x, theta_0, theta_1))
    assert y.shape == x.shape and y.dtype == jnp.float32
    assert jnp.allclose(y, theta_1 * x + theta_0, atol=1e-6, rtol=1e-6)

    # Ragged row count: exercises Pallas' masked edge block (no pad, no slice).
    x_r = jax.random.uniform(k2, (100, 256), dtype=jnp.float32,
                             minval=-3.0, maxval=3.0)
    y_r = jax.block_until_ready(model_number_questions(x_r, theta_0, theta_1))
    assert jnp.allclose(y_r, theta_1 * x_r + theta_0, atol=1e-6, rtol=1e-6)

    # bf16 input: kernel reads bf16 from HBM, upcasts in-vreg, writes f32
    # (torch promotion of bf16 tensor * f32 parameter).
    x_b = jax.random.uniform(k3, (64, 384), dtype=jnp.bfloat16,
                             minval=-2.0, maxval=2.0)
    y_b = jax.block_until_ready(model_number_questions(x_b, theta_0, theta_1))
    assert y_b.dtype == jnp.float32
    ref_b = theta_1 * x_b.astype(jnp.float32) + theta_0
    assert jnp.allclose(y_b, ref_b, atol=1e-6, rtol=1e-6)

    # Tiny input -> plain fused-XLA fast path.
    x_s = jax.random.uniform(k4, (8, 128), dtype=jnp.float32,
                             minval=0.0, maxval=10.0)
    y_s = jax.block_until_ready(model_number_questions(x_s, theta_0, theta_1))
    assert jnp.allclose(y_s, theta_1 * x_s + theta_0, atol=1e-6, rtol=1e-6)

    # Lane-unfriendly ragged shape -> fast path.
    x_q = jax.random.uniform(k5, (5, 37), dtype=jnp.float32,
                             minval=-3.0, maxval=3.0)
    y_q = jax.block_until_ready(model_number_questions(x_q, theta_0, theta_1))
    assert jnp.allclose(y_q, theta_1 * x_q + theta_0, atol=1e-6, rtol=1e-6)

    print("KERNEL_OK")
</pallas_src>

<mosaic_0001>
module attributes {stable_mosaic.version = 11 : i64} {
  func.func @_affine_kernel(%arg0: i32, %arg1: i32, %arg2: memref<2xf32, #tpu.memory_space<smem>>, %arg3: memref<64x256xf32, #tpu.memory_space<vmem>>, %arg4: memref<64x256xf32, #tpu.memory_space<vmem>>) attributes {dimension_semantics = [#tpu.dimension_semantics<parallel>, #tpu.dimension_semantics<parallel>], iteration_bounds = array<i64: 2, 1>, scalar_prefetch = 1 : i64, scratch_operands = 0 : i64, tpu.core_type = #tpu.core_type<tc>, window_params = [{transform_indices = @transform_0, window_bounds = array<i64: 64, 256>}, {transform_indices = @transform_1, window_bounds = array<i64: 64, 256>}]} {
    %c0 = arith.constant 0 : index
    %0 = memref.load %arg2[%c0] : memref<2xf32, #tpu.memory_space<smem>>
    %c1 = arith.constant 1 : index
    %1 = memref.load %arg2[%c1] : memref<2xf32, #tpu.memory_space<smem>>
    %c0_0 = arith.constant 0 : index
    %c0_1 = arith.constant 0 : index
    %2 = vector.load %arg3[%c0_0, %c0_1] : memref<64x256xf32, #tpu.memory_space<vmem>>, vector<64x256xf32>
    %3 = vector.broadcast %0 : f32 to vector<64x256xf32>
    %4 = arith.mulf %2, %3 : vector<64x256xf32>
    %5 = vector.broadcast %1 : f32 to vector<64x256xf32>
    %6 = arith.addf %4, %5 : vector<64x256xf32>
    %c0_2 = arith.constant 0 : index
    %c0_3 = arith.constant 0 : index
    %7 = vector.load %arg4[%c0_2, %c0_3] : memref<64x256xf32, #tpu.memory_space<vmem>>, vector<64x256xf32>
    tpu.vector_store %arg4[%c0_2, %c0_3], %6 {strides = array<i32>} : memref<64x256xf32, #tpu.memory_space<vmem>>, vector<64x256xf32>,
    return
  }
  func.func @transform_0(%arg0: i32, %arg1: i32, %arg2: memref<2xf32, #tpu.memory_space<smem>>) -> (i32, i32) {
    %c0_i32 = arith.constant 0 : i32
    return %arg0, %arg1 : i32, i32
  }
  func.func @transform_1(%arg0: i32, %arg1: i32, %arg2: memref<2xf32, #tpu.memory_space<smem>>) -> (i32, i32) {
    %c0_i32 = arith.constant 0 : i32
    return %arg0, %arg1 : i32, i32
  }
}

</mosaic_0001>

<bundles_post_ra>
// kernel: tpu_custom_call.1
= control target key start
LH: loop header
LB: loop body
LE: loop exit
PB: predicated region body
PF: predicated region fallthrough
CT: control target
= control target key end

     0   :  { %s544_s9 = smov [#allocation3]   ;;  %s756_s0 = inlined_call_operand.hbm [shape: f32[2], index: 0, kind: input, shape index: {}]   ;;  %s757_s1 = inlined_call_operand.hbm [shape: f32[128,256], index: 1, kind: input, shape index: {}]   ;;  %s758_s2 = inlined_call_operand.hbm [shape: f32[128,256], index: 2, kind: output, shape index: {}]  }
   0x1   :  { %8 = dma.hbm_to_smem %s756_s0, 16, %s544_s9, [#allocation2] }
   0x2   :  { %510 = dma.done.wait [#allocation2], 16 }
   0x3   :  { %511 = vsyncadd [#allocation2], 4294967280 }
   0x4   :  { %10 = sfence }
   0x5   :  { %11 = vsyncpa [#allocation5], 0 }
   0x6   :  { %13 = vsyncpa [#allocation5 + $0x1], 0 }
   0x7   :  { %14 = vsyncpa [#allocation6], 0 }
   0x8   :  { %16 = vsyncpa [#allocation6 + $0x1], 0  ;;  %s569_s12 = smov 0   ;;  %s571_s13 = smov 0  }
   0x9   :  { %s573_s14 = smov 0   ;;  %s575_s15 = smov 0  }
   0xa   :  { %s577_s16 = smov 0   ;;  %s579_s17 = smov 0  }
   0xb LB: > { %s335_s0 = sadd.s32 4294967295, %s542_s17   ;;  %s336_s18 = sadd.s32 4294967294, %s542_s17   ;;  %s542_s17 = sphi %s579_s17, %s22_s17   ;;  %s538_s16 = sphi %s577_s16, %s769_s16   ;;  %s534_s15 = sphi %s575_s15, %s768_s15   ;;  %s530_s14 = sphi %s573_s14, %s767_s14   ;;  %s526_s13 = sphi %s571_s13, %s766_s13   ;;  %s522_s12 = sphi %s569_s12, %s765_s12  }
   0xc   : > { %s34_s19 = sadd.s32 1, %s538_s16  ;;  %s43_s20 = sadd.s32 1, %s530_s14 }
   0xd   : > { %p36_p0 = scmp.ge.s32.totalorder %s34_s19, 2  ;;  %p50_p1 = scmp.ne.s32.totalorder %s530_s14, %s526_s13 }
   0xe   : > { %p51_p2 = scmp.eq.s32.totalorder %s542_s17, 0  ;;  %p56_p3 = scmp.ne.s32.totalorder %s526_s13, %s522_s12 }
   0xf   : > { %s771_s19 = smov (%p36_p0, %s34_s19), 0  ;;  %p57_p5 = scmp.eq.s32.totalorder %s335_s0, 0 }
  0x10   : > { %p610_p4 = por %p51_p2, %p50_p1  ;;  %s38_s22 = ssub.s32 %s538_s16, %s771_s19 }
  0x11   : > { %p82_p6 = scmp.eq.s32.totalorder %s335_s0, 1  ;;  %p41_p7 = scmp.eq.s32.totalorder %s38_s22, 0 }
  0x12   : > { %p616_p8 = por %p57_p5, %p56_p3  ;;  %p88_p10 = scmp.eq.s32.totalorder %s336_s18, 1 }
  0x13   : > { %p620_p9 = por %p82_p6, %p50_p1  ;;  %p369_p13 = scmp.lt.s32.totalorder %s542_s17, 2 }
  0x14   : > { %s625_s25 = scalar_select %p41_p7, %s530_s14, %s43_s20  }
  0x15   : > { %p627_p11 = por %p88_p10, %p56_p3  ;;  %s108_s27 = sand.u32 1, %s530_s14  }
  0x16   : > { %s339_s28 = sshll.u32 %s108_s27, 7  ;;  %s354_s29 = sshll.u32 %s538_s16, 11 }
  0x17   : > { %s121_s4 = scalar_lea.hbm %s757_s1, %s354_s29  ;;  %s112_s5 = scalar_lea.vmem [#allocation4], %s339_s28 }
  0x18   : > { %s122_s6 = sshll.u32 %s112_s5, 4  ;;  %p640_p0 = pnand %p369_p13, %p610_p4  ;;  %s123_s6 = int_to_ptr.vmem [resolvable:$true] %s122_s6 }
  0x19   : > { %p343_p1 = scmp.ge.s32.totalorder %s542_s17, 1  ;;  %s109_s8 = scalar_lea.sflag [#allocation5], %s108_s27 }
  0x1a   : > { %p434_p2 = pneg %p640_p0  ;;  %s445_s9 = scalar_lea.vmem %s123_s6, 2048 }
  0x1b   : > { %p446_p3 = scmp.ne.s32.totalorder %s123_s6, %s445_s9  ;;  %s545_s10 = smov [#allocation4]  }
  0x1c   : > { %s450_s11 = sshll.u32 %s545_s10, 4  ;;  %s451_s11 = int_to_ptr.vmem [resolvable:$false] %s450_s11 }
  0x1d   : > { %p448_p5 = pnand %p446_p3, %p434_p2  ;;  %s452_s0 = scalar_lea.vmem %s451_s11, 4096 }
  0x1e   : > { %p453_p7 = scmp.lt.s32.totalorder %s123_s6, %s451_s11  ;;  %p454_p10 = scmp.lt.s32.totalorder %s452_s0, %s445_s9 }
  0x1f   : > { %p449_p6 = pneg %p448_p5 }
  0x20   : > { %p455_p12 = por %p454_p10, %p453_p7 }
  0x22   : > { %p456_p4 = pnand %p455_p12, %p449_p6 }
  0x24   : > { %459 = shalt.err (!%p456_p4)
}
  0x25   : > { %s546_s18 = smov 256   ;;  %s547_s20 = smov 16  }
  0x26   : > { %364 = dma.hbm_to_vmem [thread:$0]  (!%p640_p0), %s121_s4, 2048, %s123_s6, %s109_s8, %s546_s18, %s546_s18, %s547_s20  }
  0x27   : > { %p130_p13 = scmp.lt.s32.totalorder %s542_s17, 3 }
  0x29   : > { %p131_p2 = pnand %p343_p1, %p130_p13 }
  0x2a   : > { %s653_s21 = sand.u32 (!%p131_p2), 1, %s526_s13  }
  0x2b   : > { %134 = sbr.rel (%p131_p2) target bundleno = 82 (0x52), region = 24  ;;  %s344_s22 = sshll.u32 (!%p131_p2), %s653_s21, 7 }
  0x2c   : > { %s137_s27 = scalar_lea.sflag (!%p131_p2), [#allocation5], %s653_s21  ;;  %s659_s28 = scalar_lea.vmem (!%p131_p2), [#allocation4], %s344_s22 }
  0x30   : > { %513 = dma.done.wait (%p616_p8), %s137_s27, 2048  }
  0x31   : > { %515 = vsyncadd (%p616_p8), %s137_s27, 4294965248  ;;  %s163_s29 = sld [smem:[#allocation3]]  ;;  %v165_v0 = vld [vmem:[%s659_s28] sm:$0xff]  ;;  %v166_v2 = vld [vmem:[%s659_s28 + $0x8] sm:$0xff]  ;;  %s682_s23 = scalar_lea.vmem [#allocation7], %s344_s22 }
  0x32   : > { %s346_s30 = sld [smem:[#allocation3 + $0x1]]  ;;  %v167_v3 = vld [vmem:[%s659_s28 + $0x10] sm:$0xff]  ;;  %v168_v8 = vld [vmem:[%s659_s28 + $0x18] sm:$0xff]  ;;  %v169_v9 = vld [vmem:[%s659_s28 + $0x20] sm:$0xff]  ;;  %s356_s3 = sshll.u32 %s534_s15, 11 }
  0x33   : > { %v170_v10 = vld [vmem:[%s659_s28 + $0x28] sm:$0xff]  ;;  %v171_v14 = vld [vmem:[%s659_s28 + $0x30] sm:$0xff]  ;;  %v172_v15 = vld [vmem:[%s659_s28 + $0x38] sm:$0xff]  ;;  %s248_s4 = sshll.u32 %s682_s23, 4  ;;  %s701_s6 = scalar_lea.hbm %s758_s2, %s356_s3  ;;  %s706_s4 = int_to_ptr.vmem [resolvable:$true] %s248_s4 }
  0x34   : > { %v173_v16 = vld [vmem:[%s659_s28 + $0x40] sm:$0xff]  ;;  %v174_v21 = vld [vmem:[%s659_s28 + $0x48] sm:$0xff]  ;;  %v175_v22 = vld [vmem:[%s659_s28 + $0x50] sm:$0xff]  ;;  %s232_s7 = scalar_lea.sflag [#allocation6], %s653_s21  ;;  %s460_s8 = scalar_lea.vmem %s706_s4, 2048 }
  0x35   : > { %v176_v23 = vld [vmem:[%s659_s28 + $0x58] sm:$0xff]  ;;  %v177_v28 = vld [vmem:[%s659_s28 + $0x60] sm:$0xff]  ;;  %v178_v29 = vld [vmem:[%s659_s28 + $0x68] sm:$0xff]  ;;  %p461_p8 = scmp.ne.s32.totalorder %s706_s4, %s460_s8  ;;  %s548_s9 = smov [#allocation7]  }
  0x36   : > { %v179_v30 = vld [vmem:[%s659_s28 + $0x70] sm:$0xff]  ;;  %v180_v35 = vld [vmem:[%s659_s28 + $0x78] sm:$0xff]  ;;  %s464_s10 = sshll.u32 %s548_s9, 4  ;;  %s465_s10 = int_to_ptr.vmem [resolvable:$false] %s464_s10 }
  0x37   : > { %v181_v1 = vstv %s163_s29  ;;  %p462_p12 = pnand %p461_p8, %p620_p9  ;;  %s466_s11 = scalar_lea.vmem %s465_s10, 4096 }
  0x38   : > { %v182_v4 = vmul.f32 %v181_v1, %v165_v0  ;;  %v198_v5 = vstv %s346_s30  ;;  %v183_v6 = vmul.f32 %v181_v1, %v166_v2  ;;  %v184_v7 = vmul.f32 %v181_v1, %v167_v3  ;;  %p467_p1 = scmp.lt.s32.totalorder %s706_s4, %s465_s10  ;;  %p468_p3 = scmp.lt.s32.totalorder %s466_s11, %s460_s8 }
  0x39   : > { %v185_v11 = vmul.f32 %v181_v1, %v168_v8  ;;  %v186_v12 = vmul.f32 %v181_v1, %v169_v9  ;;  %v187_v13 = vmul.f32 %v181_v1, %v170_v10  ;;  %v188_v20 = vmul.f32 %v181_v1, %v171_v14  ;;  %p463_p0 = pneg %p462_p12 }
  0x3a   : > { %v199_v17 = vadd.f32 %v198_v5, %v182_v4  ;;  %v200_v18 = vadd.f32 %v198_v5, %v183_v6  ;;  %v201_v19 = vadd.f32 %v198_v5, %v184_v7  ;;  %v189_v27 = vmul.f32 %v181_v1, %v172_v15  ;;  %p469_p5 = por %p468_p3, %p467_p1 }
  0x3b   : > { %v202_v24 = vadd.f32 %v198_v5, %v185_v11  ;;  %v203_v25 = vadd.f32 %v198_v5, %v186_v12  ;;  %v204_v26 = vadd.f32 %v198_v5, %v187_v13  ;;  %v205_v31 = vadd.f32 %v198_v5, %v188_v20 }
  0x3c   : > { %215 = vst [vmem:[%s682_s23] sm:$0xff] %v199_v17  ;;  %216 = vst [vmem:[%s682_s23 + $0x8] sm:$0xff] %v200_v18  ;;  %v190_v32 = vmul.f32 %v181_v1, %v173_v16  ;;  %v191_v33 = vmul.f32 %v181_v1, %v174_v21  ;;  %v192_v34 = vmul.f32 %v181_v1, %v175_v22  ;;  %p470_p6 = pnand %p469_p5, %p463_p0 }
  0x3d   : > { %217 = vst [vmem:[%s682_s23 + $0x10] sm:$0xff] %v201_v19  ;;  %218 = vst [vmem:[%s682_s23 + $0x18] sm:$0xff] %v202_v24  ;;  %v206_v36 = vadd.f32 %v198_v5, %v189_v27  ;;  %v193_v37 = vmul.f32 %v181_v1, %v176_v23  ;;  %v194_v38 = vmul.f32 %v181_v1, %v177_v28 }
  0x3e   : > { %219 = vst [vmem:[%s682_s23 + $0x20] sm:$0xff] %v203_v25  ;;  %220 = vst [vmem:[%s682_s23 + $0x28] sm:$0xff] %v204_v26  ;;  %v195_v39 = vmul.f32 %v181_v1, %v178_v29  ;;  %v207_v40 = vadd.f32 %v198_v5, %v190_v32  ;;  %v208_v41 = vadd.f32 %v198_v5, %v191_v33 }
  0x3f   : > { %221 = vst [vmem:[%s682_s23 + $0x30] sm:$0xff] %v205_v31  ;;  %v209_v42 = vadd.f32 %v198_v5, %v192_v34  ;;  %v196_v43 = vmul.f32 %v181_v1, %v179_v30  ;;  %222 = vst [vmem:[%s682_s23 + $0x38] sm:$0xff] %v206_v36  ;;  %v210_v44 = vadd.f32 %v198_v5, %v193_v37 }
  0x40   : > { %v211_v45 = vadd.f32 %v198_v5, %v194_v38  ;;  %v212_v46 = vadd.f32 %v198_v5, %v195_v39  ;;  %v197_v47 = vmul.f32 %v181_v1, %v180_v35  ;;  %223 = vst [vmem:[%s682_s23 + $0x40] sm:$0xff] %v207_v40  ;;  %224 = vst [vmem:[%s682_s23 + $0x48] sm:$0xff] %v208_v41 }
  0x41   : > { %225 = vst [vmem:[%s682_s23 + $0x50] sm:$0xff] %v209_v42  ;;  %v213_v48 = vadd.f32 %v198_v5, %v196_v43  ;;  %226 = vst [vmem:[%s682_s23 + $0x58] sm:$0xff] %v210_v44 }
  0x42   : > { %227 = vst [vmem:[%s682_s23 + $0x60] sm:$0xff] %v211_v45  ;;  %228 = vst [vmem:[%s682_s23 + $0x68] sm:$0xff] %v212_v46  ;;  %v214_v49 = vadd.f32 %v198_v5, %v197_v47 }
  0x43   : > { %229 = vst [vmem:[%s682_s23 + $0x70] sm:$0xff] %v213_v48 }
  0x44   : > { %230 = vst [vmem:[%s682_s23 + $0x78] sm:$0xff] %v214_v49 }
  0x45   : > { %473 = shalt.err (!%p470_p6)
}
  0x46   : > { %s474_s0 = scalar_lea.hbm %s701_s6, 2048  ;;  %s478_s22 = scalar_lea.hbm %s758_s2, 4096 }
  0x47   : > { %p475_p7 = scmp.ne.s32.totalorder %s701_s6, %s474_s0  ;;  %p479_p13 = scmp.lt.s32.totalorder %s701_s6, %s758_s2 }
  0x48   : > { %p480_p2 = scmp.lt.s32.totalorder %s478_s22, %s474_s0 }
  0x49   : > { %p476_p10 = pnand %p475_p7, %p620_p9 }
  0x4a   : > { %p481_p8 = por %p480_p2, %p479_p13 }
  0x4b   : > { %p477_p4 = pneg %p476_p10 }
  0x4d   : > { %p482_p12 = pnand %p481_p8, %p477_p4 }
  0x4f   : > { %485 = shalt.err (!%p482_p12)
}
  0x50   : > { %s549_s29 = smov 256   ;;  %s550_s30 = smov 16  }
  0x51   : > { %359 = dma.vmem_to_hbm [thread:$0]  (%p620_p9), %s706_s4, 2048, %s701_s6, %s232_s7, %s549_s29, %s549_s29, %s550_s30  }
  0x52 PF: > { %s263_s23 = sand.u32 1, %s522_s12   ;;  %p764_p0 = scmp.ge.s32.totalorder %s542_s17, 2 }
  0x53   : > { %s264_s3 = scalar_lea.sflag [#allocation6], %s263_s23 }
  0x54   : > { %p366_p1 = pnand %p764_p0, %p627_p11 }
  0x56   : > { %p367_p3 = pneg %p366_p1 }
  0x58   : > { %517 = dma.done.wait (%p367_p3), %s264_s3, 2048  }
  0x59   : > { %519 = vsyncadd (%p367_p3), %s264_s3, 4294965248  ;;  %s22_s17 = sadd.s32 1, %s542_s17   ;;  %s765_s12 = smov %s526_s13 }
  0x5a   : > { %p19_p5 = scmp.ge.s32.totalorder %s22_s17, 4   ;;  %s766_s13 = smov %s530_s14 }
  0x5b   : > { %s767_s14 = smov %s625_s25  ;;  %s768_s15 = smov %s538_s16 }
  0x5c   : > { %s769_s16 = smov %s771_s19  ;;  %21 = sbr.rel (!%p19_p5) target bundleno = 11 (0xb), region = 69 }
  0x61   :  { %269 = vsyncpa [#allocation5], 1 }
  0x62   :  { %271 = vsyncpa [#allocation5 + $0x1], 1 }
  0x63   :  { %272 = vsyncpa [#allocation6], 1 }
  0x64   :  { %274 = vsyncpa [#allocation6 + $0x1], 1 }

</bundles_post_ra>
